<compile_context>
chip_gen: v7x
topology: tpu7x:2x2x1
jax: 0.10.0
libtpu: 0.0.40
codegen_flags: <defaults>
</compile_context>

<pallas_src>
import functools

import jax
import jax.numpy as jnp
from jax import lax
from jax.experimental import pallas as pl
from jax.experimental.pallas import tpu as pltpu


def _self_attention_kernel(x_ref, wqkv_ref, o_ref, *, d_out, compute_dtype):
    # x_ref:    (b_blk, S, d_in) block of the batch
    # wqkv_ref: (d_in, 3*d_out)  fused [Wq * 1/sqrt(d_out) | Wk | Wv]
    # o_ref:    (b_blk, S, d_out)
    b_blk, s, d_in = x_ref.shape

    x2d = x_ref[...].reshape(b_blk * s, d_in).astype(compute_dtype)
    wqkv = wqkv_ref[...].astype(compute_dtype)

    # Fused Q|K|V projection: one MXU matmul for every batch row in this step.
    qkv = jnp.dot(x2d, wqkv, preferred_element_type=jnp.float32)
    qkv = qkv.reshape(b_blk, s, 3 * d_out)
    q = qkv[:, :, :d_out]                  # W_query was pre-scaled by 1/sqrt(d_out)
    k = qkv[:, :, d_out:2 * d_out]
    v = qkv[:, :, 2 * d_out:]

    # scores[b, i, j] = <q_i, k_j>: contract last dims, batch over dim 0 (no k.T).
    scores = lax.dot_general(
        q.astype(compute_dtype), k.astype(compute_dtype),
        dimension_numbers=(((2,), (2,)), ((0,), (0,))),
        preferred_element_type=jnp.float32)              # (b_blk, S, S)

    # torch.triu(ones, diagonal=1): mask positions where key index j > query i.
    row = lax.broadcasted_iota(jnp.int32, (s, s), 0)
    col = lax.broadcasted_iota(jnp.int32, (s, s), 1)
    scores = jnp.where((col > row)[None, :, :], -jnp.inf, scores)

    # Softmax over the *query* axis (dim=1), exactly as the reference module.
    m = jnp.max(scores, axis=1, keepdims=True)           # (b_blk, 1, S)
    e = jnp.exp(scores - m)                              # (b_blk, S, S)
    denom = jnp.sum(e, axis=1, keepdims=True)            # (b_blk, 1, S)
    attn = e * pl.reciprocal(denom, approx=False)        # broadcast multiply

    # context[b, i, :] = sum_j attn[b, i, j] * v[b, j, :]
    ctx = lax.dot_general(
        attn.astype(compute_dtype), v.astype(compute_dtype),
        dimension_numbers=(((2,), (1,)), ((0,), (0,))),
        preferred_element_type=jnp.float32)              # (b_blk, S, d_out)

    o_ref[...] = ctx.astype(o_ref.dtype)


def _pick_batch_block(b, s, target_rows=256):
    """Largest divisor of b whose per-step matmul M-dim (b_blk*s) <= target_rows."""
    best = 1
    for cand in range(1, b + 1):
        if b % cand == 0 and cand * s <= max(target_rows, s):
            best = cand
    return best


def self_attention_v1(x, w_query, w_key, w_value, *,
                      batch_block=None, compute_dtype=None):
    """x: (B, S, d_in); weights: (d_in, d_out). Returns (B, S, d_out)."""
    b, s, d_in = x.shape
    d_out = w_query.shape[1]
    if compute_dtype is None:
        compute_dtype = x.dtype          # pass jnp.bfloat16 for the bf16 MXU path
    if batch_block is None:
        batch_block = _pick_batch_block(b, s)
    assert b % batch_block == 0

    # Fuse the three projections; fold the 1/sqrt(d_out) score scale into W_q.
    scale = jnp.asarray(1.0 / (d_out ** 0.5), dtype=w_query.dtype)
    w_qkv = jnp.concatenate([w_query * scale, w_key, w_value], axis=1)

    kernel = functools.partial(_self_attention_kernel,
                               d_out=d_out, compute_dtype=compute_dtype)

    return pl.pallas_call(
        kernel,
        out_shape=jax.ShapeDtypeStruct((b, s, d_out), x.dtype),
        grid_spec=pltpu.PrefetchScalarGridSpec(
            num_scalar_prefetch=0,
            grid=(b // batch_block,),
            in_specs=[
                pl.BlockSpec((batch_block, s, d_in), lambda i: (i, 0, 0)),
                pl.BlockSpec((d_in, 3 * d_out), lambda i: (0, 0)),
            ],
            out_specs=pl.BlockSpec((batch_block, s, d_out),
                                   lambda i: (i, 0, 0)),
        ),
        compiler_params=pltpu.CompilerParams(
            dimension_semantics=("parallel",),
            # Budgeted against v7x's 64 MiB physical / 32 MiB default-scoped VMEM.
            vmem_limit_bytes=32 * 1024 * 1024,
        ),
    )(x, w_qkv)


def _reference(x, w_query, w_key, w_value):
    """Pure-JAX reference matching the PyTorch forward exactly."""
    d_out = w_key.shape[-1]
    keys = jnp.matmul(x, w_key)
    queries = jnp.matmul(x, w_query)
    values = jnp.matmul(x, w_value)
    scores = jnp.matmul(queries, jnp.swapaxes(keys, -2, -1)) / (d_out ** 0.5)
    s = x.shape[1]
    mask = jnp.triu(jnp.ones((s, s), dtype=bool), k=1)
    scores = jnp.where(mask[None, :, :], -jnp.inf, scores)
    weights = jax.nn.softmax(scores, axis=1)   # dim=1, as in the torch code
    return jnp.matmul(weights, values)


if __name__ == "__main__":
    key = jax.random.PRNGKey(0)
    k_x, k_q, k_k, k_v = jax.random.split(key, 4)

    batch, seq, d_in, d_out = 2, 8, 32, 32

    x = jax.random.normal(k_x, (batch, seq, d_in), dtype=jnp.float32)
    # torch.rand -> uniform [0, 1)
    w_query = jax.random.uniform(k_q, (d_in, d_out), dtype=jnp.float32)
    w_key = jax.random.uniform(k_k, (d_in, d_out), dtype=jnp.float32)
    w_value = jax.random.uniform(k_v, (d_in, d_out), dtype=jnp.float32)

    out = self_attention_v1(x, w_query, w_key, w_value)
    out = jax.block_until_ready(out)

    ref = _reference(x, w_query, w_key, w_value)
    assert out.shape == (batch, seq, d_out)
    assert jnp.allclose(out, ref, atol=1e-4, rtol=1e-4), "mismatch vs reference"

    print("KERNEL_OK")
</pallas_src>

<mosaic_0001>
module attributes {stable_mosaic.version = 11 : i64} {
  func.func @_self_attention_kernel(%arg0: i32, %arg1: memref<2x8x32xf32, #tpu.memory_space<vmem>>, %arg2: memref<32x96xf32, #tpu.memory_space<vmem>>, %arg3: memref<2x8x32xf32, #tpu.memory_space<vmem>>) attributes {dimension_semantics = [#tpu.dimension_semantics<parallel>], iteration_bounds = array<i64: 1>, scalar_prefetch = 0 : i64, scratch_operands = 0 : i64, tpu.core_type = #tpu.core_type<tc>, window_params = [{transform_indices = @transform_0, window_bounds = array<i64: 2, 8, 32>}, {pipeline_mode = #tpu.pipeline_mode<synchronous>, transform_indices = @transform_1, window_bounds = array<i64: 32, 96>}, {transform_indices = @transform_2, window_bounds = array<i64: 2, 8, 32>}]} {
    %c0 = arith.constant 0 : index
    %c0_0 = arith.constant 0 : index
    %c0_1 = arith.constant 0 : index
    %0 = vector.load %arg1[%c0, %c0_0, %c0_1] : memref<2x8x32xf32, #tpu.memory_space<vmem>>, vector<2x8x32xf32>
    %1 = vector.shape_cast %0 : vector<2x8x32xf32> to vector<16x32xf32>
    %c0_2 = arith.constant 0 : index
    %c0_3 = arith.constant 0 : index
    %2 = vector.load %arg2[%c0_2, %c0_3] : memref<32x96xf32, #tpu.memory_space<vmem>>, vector<32x96xf32>
    %cst = arith.constant dense<0.000000e+00> : vector<16x96xf32>
    %3 = tpu.matmul %1, %2, %cst {dimension_numbers = #tpu.dot_dimension_numbers<[1], [0], [0], [1], [0, 0, 1, 1], [], []>} : vector<16x32xf32>, vector<32x96xf32>, vector<16x96xf32> -> vector<16x96xf32>
    %4 = vector.shape_cast %3 : vector<16x96xf32> to vector<2x8x96xf32>
    %5 = vector.extract_strided_slice %4 {offsets = [0, 0, 0], sizes = [2, 8, 32], strides = [1, 1, 1]} : vector<2x8x96xf32> to vector<2x8x32xf32>
    %6 = vector.extract_strided_slice %4 {offsets = [0, 0, 32], sizes = [2, 8, 32], strides = [1, 1, 1]} : vector<2x8x96xf32> to vector<2x8x32xf32>
    %7 = vector.extract_strided_slice %4 {offsets = [0, 0, 64], sizes = [2, 8, 32], strides = [1, 1, 1]} : vector<2x8x96xf32> to vector<2x8x32xf32>
    %cst_4 = arith.constant dense<0.000000e+00> : vector<2x8x8xf32>
    %8 = tpu.matmul %5, %6, %cst_4 {dimension_numbers = #tpu.dot_dimension_numbers<[2], [2], [1], [1], [0, 0, 0, 1, 1, 1], [0], [0]>} : vector<2x8x32xf32>, vector<2x8x32xf32>, vector<2x8x8xf32> -> vector<2x8x8xf32>
    %9 = tpu.iota {dimensions = array<i32: 0>} : vector<8x8xi32>
    %10 = tpu.iota {dimensions = array<i32: 1>} : vector<8x8xi32>
    %11 = arith.cmpi sgt, %10, %9 : vector<8x8xi32>
    %12 = vector.shape_cast %11 : vector<8x8xi1> to vector<1x8x8xi1>
    %cst_5 = arith.constant 0xFF800000 : f32
    %13 = vector.shape_cast %12 : vector<1x8x8xi1> to vector<1x8x8xi1>
    %14 = vector.broadcast %13 : vector<1x8x8xi1> to vector<2x8x8xi1>
    %15 = vector.broadcast %cst_5 : f32 to vector<2x8x8xf32>
    %16 = arith.select %14, %15, %8 : vector<2x8x8xi1>, vector<2x8x8xf32>
    %cst_6 = arith.constant dense<0xFF800000> : vector<2x8xf32>
    %17 = vector.multi_reduction <maximumf>, %16, %cst_6 [1] : vector<2x8x8xf32> to vector<2x8xf32>
    %18 = vector.shape_cast %17 : vector<2x8xf32> to vector<2x1x8xf32>
    %19 = vector.broadcast %18 : vector<2x1x8xf32> to vector<2x8x8xf32>
    %20 = arith.subf %16, %19 : vector<2x8x8xf32>
    %21 = math.exp %20 : vector<2x8x8xf32>
    %cst_7 = arith.constant dense<0.000000e+00> : vector<2x8xf32>
    %22 = vector.multi_reduction <add>, %21, %cst_7 [1] : vector<2x8x8xf32> to vector<2x8xf32>
    %23 = vector.shape_cast %22 : vector<2x8xf32> to vector<2x1x8xf32>
    %24 = tpu.reciprocal %23 : vector<2x1x8xf32> -> vector<2x1x8xf32>
    %25 = vector.broadcast %24 : vector<2x1x8xf32> to vector<2x8x8xf32>
    %26 = arith.mulf %21, %25 : vector<2x8x8xf32>
    %cst_8 = arith.constant dense<0.000000e+00> : vector<2x8x32xf32>
    %27 = tpu.matmul %26, %7, %cst_8 {dimension_numbers = #tpu.dot_dimension_numbers<[2], [1], [1], [2], [0, 0, 0, 1, 1, 2], [0], [0]>} : vector<2x8x8xf32>, vector<2x8x32xf32>, vector<2x8x32xf32> -> vector<2x8x32xf32>
    %c0_9 = arith.constant 0 : index
    %c0_10 = arith.constant 0 : index
    %c0_11 = arith.constant 0 : index
    %28 = vector.load %arg3[%c0_9, %c0_10, %c0_11] : memref<2x8x32xf32, #tpu.memory_space<vmem>>, vector<2x8x32xf32>
    tpu.vector_store %arg3[%c0_9, %c0_10, %c0_11], %27 {strides = array<i32>} : memref<2x8x32xf32, #tpu.memory_space<vmem>>, vector<2x8x32xf32>,
    return
  }
  func.func @transform_0(%arg0: i32) -> (i32, i32, i32) {
    %c0_i32 = arith.constant 0 : i32
    %c0_i32_0 = arith.constant 0 : i32
    %c0_i32_1 = arith.constant 0 : i32
    return %arg0, %c0_i32, %c0_i32_0 : i32, i32, i32
  }
  func.func @transform_1(%arg0: i32) -> (i32, i32) {
    %c0_i32 = arith.constant 0 : i32
    %c0_i32_0 = arith.constant 0 : i32
    %c0_i32_1 = arith.constant 0 : i32
    return %c0_i32, %c0_i32_0 : i32, i32
  }
  func.func @transform_2(%arg0: i32) -> (i32, i32, i32) {
    %c0_i32 = arith.constant 0 : i32
    %c0_i32_0 = arith.constant 0 : i32
    %c0_i32_1 = arith.constant 0 : i32
    return %arg0, %c0_i32, %c0_i32_0 : i32, i32, i32
  }
}

</mosaic_0001>

<bundles_post_ra>
// kernel: tpu_custom_call.1
= control target key start
LH: loop header
LB: loop body
LE: loop exit
PB: predicated region body
PF: predicated region fallthrough
CT: control target
= control target key end

     0   :  { %7 = vsyncpa [#allocation3], 0  ;;  %s739_s0 = inlined_call_operand.hbm [shape: f32[2,8,32], index: 0, kind: input, shape index: {}]   ;;  %s740_s1 = inlined_call_operand.hbm [shape: f32[32,96], index: 1, kind: input, shape index: {}]   ;;  %s741_s2 = inlined_call_operand.hbm [shape: f32[2,8,32], index: 2, kind: output, shape index: {}]  }
   0x1   :  { %8 = vsyncpa [#allocation6], 0 }
   0x2   :  { %9 = vsyncpa [#allocation4], 0  ;;  %s652_s9 = smov [#allocation2]   ;;  %s580_s13 = scalar_lea.hbm %s739_s0, 256 }
   0x3   :  { %s15_s10 = sshll.u32 %s652_s9, 4  ;;  %p581_p0 = scmp.ne.s32.totalorder %s739_s0, %s580_s13  ;;  %s16_s10 = int_to_ptr.vmem [resolvable:$true] %s15_s10 }
   0x4   :  { %p584_p1 = scmp.lt.u32.totalorder %s580_s13, %s739_s0 }
   0x6   :  { %p586_p2 = pnand %p584_p1, %p581_p0 }
   0x8   :  { %589 = shalt.err (!%p586_p2)
}
   0x9   :  { %s590_s18 = scalar_lea.vmem %s16_s10, 256  ;;  %p595_p4 = scmp.lt.s32.totalorder %s16_s10, %s16_s10 }
   0xa   :  { %p591_p3 = scmp.ne.s32.totalorder %s16_s10, %s590_s18  ;;  %p596_p5 = scmp.lt.s32.totalorder %s590_s18, %s590_s18 }
   0xc   :  { %p597_p6 = por %p596_p5, %p595_p4 }
   0xe   :  { %p598_p7 = pnand %p597_p6, %p591_p3 }
  0x10   :  { %601 = shalt.err (!%p598_p7)
}
  0x11   :  { %s653_s19 = smov 128   ;;  %s654_s20 = smov 8  }
  0x12   :  { %21 = dma.hbm_to_vmem [thread:$0]  %s739_s0, 256, %s16_s10, [#allocation3], %s653_s19, %s653_s19, %s654_s20  }
  0x13   :  { %s655_s23 = smov [#allocation5]   ;;  %s602_s27 = scalar_lea.hbm %s740_s1, 512 }
  0x14   :  { %s27_s24 = sshll.u32 %s655_s23, 4  ;;  %p603_p8 = scmp.ne.s32.totalorder %s740_s1, %s602_s27  ;;  %s28_s24 = int_to_ptr.vmem [resolvable:$true] %s27_s24 }
  0x15   :  { %p606_p9 = scmp.lt.u32.totalorder %s602_s27, %s740_s1 }
  0x17   :  { %p608_p10 = pnand %p606_p9, %p603_p8 }
  0x19   :  { %611 = shalt.err (!%p608_p10)
}
  0x1a   :  { %s612_s4 = scalar_lea.vmem %s28_s24, 512  ;;  %p617_p12 = scmp.lt.s32.totalorder %s28_s24, %s28_s24 }
  0x1b   :  { %p613_p11 = scmp.ne.s32.totalorder %s28_s24, %s612_s4  ;;  %p618_p13 = scmp.lt.s32.totalorder %s612_s4, %s612_s4 }
  0x1d   :  { %p619_p0 = por %p618_p13, %p617_p12 }
  0x1f   :  { %p620_p1 = pnand %p619_p0, %p613_p11 }
  0x21   :  { %623 = shalt.err (!%p620_p1)
}
  0x22   :  { %33 = dma.hbm_to_vmem [thread:$0]  %s740_s1, 512, %s28_s24, [#allocation6], %s653_s19, %s653_s19, %s654_s20  }
  0x23   :  { %646 = dma.done.wait [#allocation3], 256  }
  0x24   :  { %647 = vsyncadd [#allocation3], 4294967040 }
  0x25   :  { %648 = dma.done.wait [#allocation6], 512  }
  0x26   :  { %649 = vsyncadd [#allocation6], 4294966784  ;;  %vm46_vm0 = vcmask 261120   ;;  %v42_v0 = vld [vmem:[#allocation5] sm:$0xff]  ;;  %v43_v1 = vld [vmem:[#allocation5 + $0x8] sm:$0xff]  ;;  %v656_v8 = vmov 0.0   ;;  %v282_v15 = vlaneseq }
  0x27   :  { %v44_v2 = vld [vmem:[#allocation5 + $0x10] sm:$0xff]  ;;  %v555_v3 = vpack.c.bf16 %v43_v1, %v42_v0  ;;  %v45_v4 = vld [vmem:[#allocation5 + $0x18] sm:$0xff]  ;;  %535 = vmatprep.subr.mxu1 %v656_v8  ;;  %vm657_vm1 = vmmov 0   ;;  %s658_s1 = smov 64   ;;  %s659_s6 = smov 96   ;;  %vm291_vm3 = vcmask 64512  }
  0x28   :  { %v40_v5 = vld [vmem:[#allocation2] sm:$0xff]  ;;  %v559_v6 = vpack.c.bf16 %v45_v4, %v44_v2  ;;  %v41_v7 = vld [vmem:[#allocation2 + $0x8] sm:$0xff]  ;;  %537 = vmatprep.mubr.msk.f32.mxu1 %vm657_vm1, %v656_v8  ;;  %v283_v16 = vshrl.u32 %v282_v15, 7  ;;  %v285_v17 = vand.u32 127, %v282_v15  ;;  %s660_s7 = smov [#allocation7]  }
  0x29   :  { %532 = vmatprep.mubr.msk.f32.mxu0 %vm46_vm0, %v40_v5  ;;  %556 = vmatprep.subr.bf16.mxu0 %v555_v3  ;;  %s489_s8 = sshll.u32 %s660_s7, 4  ;;  %s490_s8 = int_to_ptr.vmem [resolvable:$true] %s489_s8 }
  0x2a   :  { %558 = vmatpush3.bf16.msra.mxu0 %v555_v3  ;;  %vm286_vm2 = vcmp.gt.s32.totalorder %v285_v17, %v283_v16  ;;  %s624_s9 = scalar_lea.vmem %s490_s8, 256  ;;  %p629_p3 = scmp.lt.s32.totalorder %s490_s8, %s490_s8 }
  0x2b   :  { %560 = vmatprep.subr.bf16.mxu0 %v559_v6  ;;  %p625_p2 = scmp.ne.s32.totalorder %s490_s8, %s624_s9  ;;  %p630_p4 = scmp.lt.s32.totalorder %s624_s9, %s624_s9 }
  0x2d   :  { %p631_p5 = por %p630_p4, %p629_p3 }
  0x2e   :  { %562 = vmatpush3.bf16.msra.mxu0 %v559_v6 }
  0x2f   :  { %545 = vmatprep.subr.mxu0 %v656_v8  ;;  %p632_p6 = pnand %p631_p5, %p625_p2 }
  0x31   :  { %533 = vmatmul.mubr.msk.f32.vlgmr.msra.gmra.mrb[0].mxu0 %vm46_vm0, %v41_v7 }
  0x32   :  { %547 = vmatprep.mubr.msk.f32.mxu0 %vm657_vm1, %v656_v8 }
 0x104   :  { %v534_v9 = vpop.f32.mrb[0].mxu0 }
 0x105   :  { %v119_v10 = vpop.f32.mrb[1].mxu0 }
 0x106   :  { %330 = vrot.lane.b32.xlu1 %v119_v10, %s658_s1  ;;  %129 = vrot.lane.b32.xlu0 %v119_v10, %s659_s6 }
 0x10a   :  { %406 = vrot.lane.b32.xlu1 %v534_v9, %s658_s1  ;;  %206 = vrot.lane.b32.xlu0 %v534_v9, %s659_s6 }
 0x178   :  { %v331_v11 = vpop.permute.xlu1 %330  ;;  %v130_v12 = vpop.permute.xlu0 %129 }
 0x179   :  { %536 = vmatpush3.xpose.msk.msra.mxu1 %vm46_vm0, %v130_v12  ;;  %546 = vmatpush3.msra.mxu0 %v331_v11 }
 0x17a   :  { %540 = vmatprep.subr.mxu1 %v656_v8 }
 0x17c   :  { %538 = vmatmul.mubr.msk.f32.vlgmr.msra.gmra.mrb[0].mxu1 %vm46_vm0, %v119_v10  ;;  %v207_v13 = vpop.permute.xlu0 %206  ;;  %v407_v14 = vpop.permute.xlu1 %406 }
 0x17d   :  { %541 = vmatpush3.xpose.msk.msra.mxu1 %vm46_vm0, %v207_v13  ;;  %542 = vmatprep.mubr.msk.f32.mxu1 %vm657_vm1, %v656_v8 }
 0x17e   :  { %550 = vmatprep.subr.mxu1 %v656_v8 }
 0x180   :  { %543 = vmatmul.mubr.msk.f32.vlgmr.msra.gmra.mrb[2].mxu1 %vm46_vm0, %v534_v9 }
 0x181   :  { %551 = vmatpush3.msra.mxu1 %v407_v14  ;;  %552 = vmatprep.mubr.msk.f32.mxu1 %vm657_vm1, %v656_v8 }
 0x24f   :  { %v201_v18 = vpop.f32.mrb[0].mxu1 }
 0x250   :  { %v289_v19 = vsel %vm286_vm2, -inf, %v201_v18  ;;  %v539_v20 = vpop.f32.mrb[1].mxu1 }
 0x251   :  { %v292_v21 = vsel %vm291_vm3, %v289_v19, -inf }
 0x252   :  { %v293_v22 = vrot.slane %v292_v21, 4 }
 0x253   :  { %v278_v23 = vpop.f32.mrb[2].mxu1 }
 0x254   :  { %v294_v24 = vmax.f32 %v292_v21, %v293_v22  ;;  %v290_v25 = vsel %vm286_vm2, -inf, %v278_v23  ;;  %v544_v26 = vpop.f32.mrb[3].mxu1 }
 0x255   :  { %v299_v27 = vsel %vm291_vm3, %v290_v25, -inf }
 0x256   :  { %v295_v28 = vrot.slane %v294_v24, 2  ;;  %v300_v29 = vrot.slane %v299_v27, 4 }
 0x258   :  { %v296_v30 = vmax.f32 %v294_v24, %v295_v28  ;;  %v301_v31 = vmax.f32 %v299_v27, %v300_v29 }
 0x25a   :  { %v297_v32 = vrot.slane %v296_v30, 1  ;;  %v302_v33 = vrot.slane %v301_v31, 2 }
 0x25c   :  { %v298_v34 = vmax.f32 %v296_v30, %v297_v32  ;;  %v303_v35 = vmax.f32 %v301_v31, %v302_v33 }
 0x25e   :  { %v306_v36 = vsub.f32 %v289_v19, %v298_v34  ;;  %v304_v37 = vrot.slane %v303_v35, 1 }
 0x260   :  { %v308_v38 = vmul.f32 1.442695, %v306_v36  ;;  %v305_v39 = vmax.f32 %v303_v35, %v304_v37 }
 0x262   :  { %572 = vpow2.f32 %v308_v38  ;;  %v307_v40 = vsub.f32 %v290_v25, %v305_v39 }
 0x264   :  { %v310_v41 = vmul.f32 1.442695, %v307_v40 }
 0x266   :  { %574 = vpow2.f32 %v310_v41 }
 0x26c   :  { %v573_v42 = vpop.eup %572 }
 0x26d   :  { %v312_v43 = vsel %vm291_vm3, %v573_v42, 0.0 }
 0x26e   :  { %v313_v44 = vrot.slane %v312_v43, 4 }
 0x270   :  { %v575_v45 = vpop.eup %574  ;;  %v314_v46 = vadd.f32 %v313_v44, %v312_v43 }
 0x271   :  { %v319_v47 = vsel %vm291_vm3, %v575_v45, 0.0 }
 0x272   :  { %v315_v48 = vrot.slane %v314_v46, 2  ;;  %v320_v49 = vrot.slane %v319_v47, 4 }
 0x274   :  { %v316_v50 = vadd.f32 %v315_v48, %v314_v46  ;;  %v321_v51 = vadd.f32 %v320_v49, %v319_v47 }
 0x276   :  { %v317_v52 = vrot.slane %v316_v50, 1  ;;  %v322_v53 = vrot.slane %v321_v51, 2 }
 0x278   :  { %v318_v54 = vadd.f32 %v317_v52, %v316_v50  ;;  %v323_v55 = vadd.f32 %v322_v53, %v321_v51 }
 0x27a   :  { %576 = vrcp.f32 %v318_v54  ;;  %v324_v56 = vrot.slane %v323_v55, 1 }
 0x27c   :  { %v325_v57 = vadd.f32 %v324_v56, %v323_v55 }
 0x27e   :  { %578 = vrcp.f32 %v325_v57 }
 0x284   :  { %v577_v58 = vpop.eup %576 }
 0x285   :  { %v328_v59 = vmul.f32 %v577_v58, %v573_v42 }
 0x287   :  { %548 = vmatmul.mubr.msk.f32.vlgmr.msra.gmra.mrb[2].mxu0 %vm291_vm3, %v328_v59 }
 0x288   :  { %v579_v60 = vpop.eup %578 }
 0x289   :  { %v329_v61 = vmul.f32 %v579_v60, %v575_v45 }
 0x28b   :  { %553 = vmatmul.mubr.msk.f32.vlgmr.msra.gmra.mrb[4].mxu1 %vm291_vm3, %v329_v61 }
 0x35a   :  { %v402_v62 = vpop.f32.mrb[2].mxu0 }
 0x35b   :  { %482 = vst.msk [vmem:[#allocation7] sm:$0xff] %vm46_vm0, %v402_v62  ;;  %v549_v63 = vpop.f32.mrb[3].mxu0 }
 0x35e   :  { %v478_v0 = vpop.f32.mrb[4].mxu1 }
 0x35f   :  { %483 = vst.msk [vmem:[#allocation7 + $0x8] sm:$0xff] %vm46_vm0, %v478_v0  ;;  %v554_v1 = vpop.f32.mrb[5].mxu1 }
 0x360   :  { %635 = shalt.err (!%p632_p6)
}
 0x361   :  { %s636_s12 = scalar_lea.hbm %s741_s2, 256 }
 0x362   :  { %p637_p7 = scmp.ne.s32.totalorder %s741_s2, %s636_s12  ;;  %p640_p8 = scmp.lt.u32.totalorder %s636_s12, %s741_s2 }
 0x364   :  { %p642_p9 = pnand %p640_p8, %p637_p7 }
 0x366   :  { %645 = shalt.err (!%p642_p9)
}
 0x367   :  { %495 = dma.vmem_to_hbm [thread:$0]  %s490_s8, 256, %s741_s2, [#allocation4], %s653_s19, %s653_s19, %s654_s20  }
 0x368   :  { %650 = dma.done.wait [#allocation4], 256  }
 0x369   :  { %651 = vsyncadd [#allocation4], 4294967040 }
 0x36a   :  { %499 = vsyncpa [#allocation3], 1 }
 0x36b   :  { %500 = vsyncpa [#allocation6], 1 }
 0x36c   :  { %501 = vsyncpa [#allocation4], 1 }

</bundles_post_ra>
